<compile_context>
chip_gen: v6e
topology: v6e:2x2x1
jax: 0.10.0
libtpu: 0.0.40
codegen_flags: <defaults>
</compile_context>

<pallas_src>
import functools

import jax
import jax.numpy as jnp
from jax.experimental import pallas as pl
from jax.experimental.pallas import tpu as pltpu


def _rsoftmax_kernel(x_ref, o_ref, *, radix, cardinality, r):
    """Block: (Bt, C) with C = cardinality * radix * r on the lane axis."""
    x = x_ref[...].astype(jnp.float32)          # one full-width lane-dense load, f32 compute

    if radix == 1:
        # PyTorch branch: torch.sigmoid(x)
        o_ref[...] = (1.0 / (1.0 + jnp.exp(-x))).astype(o_ref.dtype)
        return

    rxr = radix * r                              # stride of one cardinality group (input)
    cxr = cardinality * r                        # stride of one radix group (output)

    # Static unroll over (cardinality, radix): everything below is elementwise
    # VPU/EUP work on 2-D lane-major slabs; no reshape / transpose / sublane reduce.
    for c in range(cardinality):
        base = c * rxr
        group = [x[:, base + k * r: base + (k + 1) * r] for k in range(radix)]  # radix x (Bt, r)

        m = group[0]
        for k in range(1, radix):
            m = jnp.maximum(m, group[k])
        exps = [jnp.exp(g - m) for g in group]
        denom = exps[0]
        for k in range(1, radix):
            denom = denom + exps[k]
        inv = pl.reciprocal(denom, approx=True)  # EUP slot (hidden under DMA)

        # Output flat order per row is (radix, cardinality, r):
        #   out[:, k*cxr + c*r + j] = softmax value of (c, k, j)
        for k in range(radix):
            lo = k * cxr + c * r
            o_ref[:, lo: lo + r] = (exps[k] * inv).astype(o_ref.dtype)


@functools.partial(jax.jit, static_argnames=("radix", "cardinality"))
def rsoftmax(x, *, radix, cardinality):
    """Pallas implementation of rSoftMax.forward.

    x: (B, C) or (B, C, 1, 1) with C divisible by radix * cardinality.
    Returns (B, C), same dtype as x.
    """
    batch = x.shape[0]
    x2 = x.reshape(batch, -1)                    # contiguous reshape: free, no HBM pass
    C = x2.shape[1]
    r = C // (cardinality * radix)
    if cardinality * radix * r != C:
        raise ValueError("channels must be divisible by radix * cardinality")

    # Row tile: single block for small batches; large multiple-of-8 tiles otherwise,
    # capped at ~4 MiB per block so the default scoped-VMEM limit is enough on every
    # TPU generation (v5e 16 MiB / v6e 32 MiB / v7x 32 MiB scoped, 64 MiB physical).
    itemsize = jnp.dtype(x2.dtype).itemsize
    if batch <= 1024:
        bt = batch
    else:
        max_rows = max(8, (4 << 20) // max(1, C * itemsize))
        bt = max(8, min(1024, (max_rows // 8) * 8))
    nb = pl.cdiv(batch, bt)

    kern = functools.partial(_rsoftmax_kernel, radix=radix, cardinality=cardinality, r=r)
    out = pl.pallas_call(
        kern,
        out_shape=jax.ShapeDtypeStruct((batch, C), x2.dtype),
        grid=(nb,),
        in_specs=[pl.BlockSpec((bt, C), lambda i: (i, 0))],
        out_specs=pl.BlockSpec((bt, C), lambda i: (i, 0)),
        compiler_params=pltpu.CompilerParams(
            # Row tiles are independent -> lets v7x shard them across its 2 TensorCores.
            dimension_semantics=("parallel",),
        ),
    )(x2)
    return out


if __name__ == "__main__":
    # TODO(synk): the surrounding mokuai_3 block (BaseConv/BatchNorm/SiLU stacks,
    # SwinTransformerBlock / PatchEmbed, channel_action / spatial_action gating) is
    # not translated here; this kernel covers the radix-softmax attention op only.
    key = jax.random.PRNGKey(0)

    # --- Case 1: radix-softmax path (radix > 1), f32 ---
    radix, cardinality = 2, 2
    B, C = 2, 32                                  # r = C / (radix*cardinality) = 8
    x = jax.random.normal(key, (B, C, 1, 1), dtype=jnp.float32)
    y = jax.block_until_ready(rsoftmax(x, radix=radix, cardinality=cardinality))
    xr = x.reshape(B, cardinality, radix, -1).transpose(0, 2, 1, 3)
    ref = jax.nn.softmax(xr, axis=1).reshape(B, -1)
    assert y.shape == (B, C)
    # approx reciprocal -> slightly relaxed tolerance
    assert jnp.allclose(y, ref, atol=5e-3, rtol=5e-3), float(jnp.max(jnp.abs(y - ref)))

    # --- Case 2: radix == 1 -> sigmoid branch ---
    x1 = jax.random.normal(jax.random.PRNGKey(1), (2, 16, 1, 1), dtype=jnp.float32)
    y1 = jax.block_until_ready(rsoftmax(x1, radix=1, cardinality=1))
    ref1 = jax.nn.sigmoid(x1.reshape(2, -1))
    assert jnp.allclose(y1, ref1, atol=1e-5, rtol=1e-5)

    # --- Case 3: bf16 I/O, cardinality 1, lane-dense C ---
    xb = jax.random.normal(jax.random.PRNGKey(2), (8, 256, 1, 1), dtype=jnp.bfloat16)
    yb = jax.block_until_ready(rsoftmax(xb, radix=2, cardinality=1))
    xrb = xb.astype(jnp.float32).reshape(8, 1, 2, -1).transpose(0, 2, 1, 3)
    refb = jax.nn.softmax(xrb, axis=1).reshape(8, -1)
    assert yb.dtype == jnp.bfloat16
    assert jnp.allclose(yb.astype(jnp.float32), refb, atol=2e-2, rtol=2e-2)

    print("KERNEL_OK")
</pallas_src>

<mosaic_0001>
module attributes {stable_mosaic.version = 11 : i64} {
  func.func @_rsoftmax_kernel(%arg0: i32, %arg1: memref<2x32xf32, #tpu.memory_space<vmem>>, %arg2: memref<2x32xf32, #tpu.memory_space<vmem>>) attributes {dimension_semantics = [#tpu.dimension_semantics<parallel>], iteration_bounds = array<i64: 1>, scalar_prefetch = 0 : i64, scratch_operands = 0 : i64, tpu.core_type = #tpu.core_type<tc>, window_params = [{transform_indices = @transform_0, window_bounds = array<i64: 2, 32>}, {transform_indices = @transform_1, window_bounds = array<i64: 2, 32>}]} {
    %c0 = arith.constant 0 : index
    %c0_0 = arith.constant 0 : index
    %0 = vector.load %arg1[%c0, %c0_0] : memref<2x32xf32, #tpu.memory_space<vmem>>, vector<2x32xf32>
    %1 = vector.extract_strided_slice %0 {offsets = [0, 0], sizes = [2, 8], strides = [1, 1]} : vector<2x32xf32> to vector<2x8xf32>
    %2 = vector.extract_strided_slice %0 {offsets = [0, 8], sizes = [2, 8], strides = [1, 1]} : vector<2x32xf32> to vector<2x8xf32>
    %3 = arith.maximumf %1, %2 : vector<2x8xf32>
    %4 = arith.subf %1, %3 : vector<2x8xf32>
    %5 = math.exp %4 : vector<2x8xf32>
    %6 = arith.subf %2, %3 : vector<2x8xf32>
    %7 = math.exp %6 : vector<2x8xf32>
    %8 = arith.addf %5, %7 : vector<2x8xf32>
    %9 = tpu.reciprocal %8 {approx = true} : vector<2x8xf32> -> vector<2x8xf32>
    %10 = arith.mulf %5, %9 : vector<2x8xf32>
    %c0_1 = arith.constant 0 : index
    %c0_2 = arith.constant 0 : index
    %11 = vector.load %arg2[%c0_1, %c0_2] : memref<2x32xf32, #tpu.memory_space<vmem>>, vector<2x8xf32>
    tpu.vector_store %arg2[%c0_1, %c0_2], %10 {strides = array<i32>} : memref<2x32xf32, #tpu.memory_space<vmem>>, vector<2x8xf32>,
    %12 = arith.mulf %7, %9 : vector<2x8xf32>
    %c0_3 = arith.constant 0 : index
    %c16 = arith.constant 16 : index
    %13 = vector.load %arg2[%c0_3, %c16] : memref<2x32xf32, #tpu.memory_space<vmem>>, vector<2x8xf32>
    tpu.vector_store %arg2[%c0_3, %c16], %12 {strides = array<i32>} : memref<2x32xf32, #tpu.memory_space<vmem>>, vector<2x8xf32>,
    %14 = vector.extract_strided_slice %0 {offsets = [0, 16], sizes = [2, 8], strides = [1, 1]} : vector<2x32xf32> to vector<2x8xf32>
    %15 = vector.extract_strided_slice %0 {offsets = [0, 24], sizes = [2, 8], strides = [1, 1]} : vector<2x32xf32> to vector<2x8xf32>
    %16 = arith.maximumf %14, %15 : vector<2x8xf32>
    %17 = arith.subf %14, %16 : vector<2x8xf32>
    %18 = math.exp %17 : vector<2x8xf32>
    %19 = arith.subf %15, %16 : vector<2x8xf32>
    %20 = math.exp %19 : vector<2x8xf32>
    %21 = arith.addf %18, %20 : vector<2x8xf32>
    %22 = tpu.reciprocal %21 {approx = true} : vector<2x8xf32> -> vector<2x8xf32>
    %23 = arith.mulf %18, %22 : vector<2x8xf32>
    %c0_4 = arith.constant 0 : index
    %c8 = arith.constant 8 : index
    %24 = vector.load %arg2[%c0_4, %c8] : memref<2x32xf32, #tpu.memory_space<vmem>>, vector<2x8xf32>
    tpu.vector_store %arg2[%c0_4, %c8], %23 {strides = array<i32>} : memref<2x32xf32, #tpu.memory_space<vmem>>, vector<2x8xf32>,
    %25 = arith.mulf %20, %22 : vector<2x8xf32>
    %c0_5 = arith.constant 0 : index
    %c24 = arith.constant 24 : index
    %26 = vector.load %arg2[%c0_5, %c24] : memref<2x32xf32, #tpu.memory_space<vmem>>, vector<2x8xf32>
    tpu.vector_store %arg2[%c0_5, %c24], %25 {strides = array<i32>} : memref<2x32xf32, #tpu.memory_space<vmem>>, vector<2x8xf32>,
    return
  }
  func.func @transform_0(%arg0: i32) -> (i32, i32) {
    %c0_i32 = arith.constant 0 : i32
    %c0_i32_0 = arith.constant 0 : i32
    return %arg0, %c0_i32 : i32, i32
  }
  func.func @transform_1(%arg0: i32) -> (i32, i32) {
    %c0_i32 = arith.constant 0 : i32
    %c0_i32_0 = arith.constant 0 : i32
    return %arg0, %c0_i32 : i32, i32
  }
}

</mosaic_0001>

<bundles_post_ra>
// kernel: rsoftmax.1
= control target key start
LH: loop header
LB: loop body
LE: loop exit
PB: predicated region body
PF: predicated region fallthrough
CT: control target
= control target key end

     0   :  { %6 = vsyncpa [#allocation3], 0  ;;  %s154_s0 = inlined_call_operand.hbm [shape: f32[2,32], index: 0, kind: input, shape index: {}]   ;;  %s155_s1 = inlined_call_operand.hbm [shape: f32[2,32], index: 1, kind: output, shape index: {}]  }
   0x1   :  { %7 = vsyncpa [#allocation4], 0  ;;  %s134_s6 = smov [#allocation2]  }
   0x2   :  { %s14_s7 = sshll.u32 %s134_s6, 4  ;;  %s15_s7 = int_to_ptr.vmem [resolvable:$true] %s14_s7 }
   0x3   :  { %s98_s8 = scalar_lea.vmem %s15_s7, 32  ;;  %p103_p1 = scmp.lt.s32.totalorder %s15_s7, %s15_s7 }
   0x4   :  { %p99_p0 = scmp.ne.s32.totalorder %s15_s7, %s98_s8  ;;  %p104_p2 = scmp.lt.s32.totalorder %s98_s8, %s98_s8 }
   0x6   :  { %p105_p3 = por %p104_p2, %p103_p1 }
   0x8   :  { %p106_p4 = pnand %p105_p3, %p99_p0 }
   0xa   :  { %109 = shalt.err (!%p106_p4)
}
   0xb   :  { %17 = dma.hbm_to_vmem [thread:$0]  %s154_s0, 32, %s15_s7, [#allocation3]  }
   0xc   :  { %130 = dma.done.wait [#allocation3], 32  }
   0xd   :  { %131 = vsyncadd [#allocation3], 4294967264  ;;  %v21_v0 = vld [vmem:[#allocation2] sm:$0x3]  ;;  %s135_s11 = smov 120   ;;  %s136_s12 = smov 8  }
   0xe   :  { %23 = vrot.lane.b32.xlu0 %v21_v0, %s135_s11  ;;  %vm44_vm0 = vcmask 58368   ;;  %vm55_vm1 = vcmask 189568   ;;  %s137_s0 = smov [#allocation5]   ;;  %vm61_vm2 = vcmask 123968   ;;  %vm63_vm3 = vcmask 255168  }
   0xf   :  { %s71_s13 = sshll.u32 %s137_s0, 4  ;;  %s72_s13 = int_to_ptr.vmem [resolvable:$true] %s71_s13 }
  0x10   :  { %s110_s14 = scalar_lea.vmem %s72_s13, 32  ;;  %p115_p6 = scmp.lt.s32.totalorder %s72_s13, %s72_s13 }
  0x11   :  { %p111_p5 = scmp.ne.s32.totalorder %s72_s13, %s110_s14  ;;  %p116_p7 = scmp.lt.s32.totalorder %s110_s14, %s110_s14 }
  0x13   :  { %p117_p8 = por %p116_p7, %p115_p6 }
  0x15   :  { %p118_p9 = pnand %p117_p8, %p111_p5 }
  0x80   :  { %v24_v1 = vpop.permute.xlu0 %23 }
  0x81   :  { %v26_v2 = vmax.f32 %v21_v0, %v24_v1 }
  0x83   :  { %31 = vrot.lane.b32.xlu0 %v26_v2, %s136_s12  ;;  %v27_v7 = vsub.f32 %v21_v0, %v26_v2 }
  0x85   :  { %v28_v8 = vmul.f32 1.442695, %v27_v7 }
  0xf5   :  { %v32_v3 = vpop.permute.xlu0 %31 }
  0xf6   :  { %v34_v4 = vsub.f32 %v21_v0, %v32_v3 }
  0xf8   :  { %v35_v5 = vmul.f32 1.442695, %v34_v4 }
  0xfa   :  { %84 = vpow2.f32 %v35_v5 }
  0xfb   :  { %86 = vpow2.f32 %v28_v8 }
 0x107   :  { %v85_v6 = vpop.eup %84 }
 0x108   :  { %38 = vrot.lane.b32.xlu1 %v85_v6, %s135_s11  ;;  %v87_v9 = vpop.eup %86 }
 0x17a   :  { %v39_v10 = vpop.permute.xlu1 %38 }
 0x17b   :  { %v41_v11 = vadd.f32 %v87_v9, %v39_v10 }
 0x17d   :  { %88 = vrcp.f32 %v41_v11 }
 0x18a   :  { %v89_v12 = vpop.eup %88 }
 0x18b   :  { %47 = vrot.lane.b32.xlu1 %v89_v12, %s136_s12  ;;  %v43_v13 = vmul.f32 %v89_v12, %v87_v9 }
 0x18d   :  { %45 = vst.msk [vmem:[#allocation5] sm:$0x3] %vm44_vm0, %v43_v13 }
 0x18f   :  { %58 = vrot.lane.b32.xlu1 %v43_v13, %s135_s11 }
 0x1fd   :  { %v48_v14 = vpop.permute.xlu1 %47 }
 0x1fe   :  { %v50_v15 = vmul.f32 %v85_v6, %v48_v14 }
 0x200   :  { %52 = vrot.lane.b32.xlu0 %v50_v15, %s136_s12 }
 0x201   :  { %v59_v17 = vpop.permute.xlu1 %58 }
 0x272   :  { %v53_v16 = vpop.permute.xlu0 %52 }
 0x273   :  { %56 = vst.msk [vmem:[#allocation5] sm:$0x3] %vm55_vm1, %v53_v16 }
 0x274   :  { %62 = vst.msk [vmem:[#allocation5] sm:$0x3] %vm61_vm2, %v59_v17 }
 0x275   :  { %64 = vst.msk [vmem:[#allocation5] sm:$0x3] %vm63_vm3, %v50_v15 }
 0x276   :  { %121 = shalt.err (!%p118_p9)
}
 0x277   :  { %74 = dma.vmem_to_hbm [thread:$0]  %s72_s13, 32, %s155_s1, [#allocation4]  }
 0x278   :  { %132 = dma.done.wait [#allocation4], 32  }
 0x279   :  { %133 = vsyncadd [#allocation4], 4294967264 }
 0x27a   :  { %78 = vsyncpa [#allocation3], 1 }
 0x27b   :  { %79 = vsyncpa [#allocation4], 1 }

</bundles_post_ra>
